<compile_context>
chip_gen: v6e
topology: v6e:2x2x1
jax: 0.10.0
libtpu: 0.0.40
codegen_flags: <defaults>
</compile_context>

<pallas_src>
import jax
import jax.numpy as jnp
from jax.experimental import pallas as pl
from jax.experimental.pallas import tpu as pltpu


def _round_up(x, m):
    return ((x + m - 1) // m) * m


# ------------------------------ Fused MLP kernel -------------------------------
def _make_mlp_kernel(num_hidden_layers, negative_slope, compute_dtype):
    """Builds a kernel with signature (x_ref, w0, b0, ..., w_out, b_out, out_ref)."""

    def kernel(x_ref, *refs):
        out_ref = refs[-1]
        params = refs[:-1]      # w0, b0, ..., w_{L-1}, b_{L-1}, w_out, b_out

        def dot(a, w):
            return jnp.dot(a.astype(compute_dtype), w.astype(compute_dtype),
                           preferred_element_type=jnp.float32)

        h = x_ref[...]                                   # (B_pad, input_size)
        for l in range(num_hidden_layers):
            w = params[2 * l][...]
            b = params[2 * l + 1][...]
            h = dot(h, w) + b                            # MXU + VPU
            h = jnp.where(h >= 0.0, h, negative_slope * h)   # LeakyReLU (pure VPU)
            # Dropout: identity in eval mode.
        w_out = params[-2][...]                          # lane-padded to 128
        b_out = params[-1][...]
        out_ref[...] = dot(h, w_out) + b_out             # lane-dense store

    return kernel


# ------------------------------ Forward wrapper --------------------------------
def heteroscedastic_dropout_forward(x, hidden_params, out_w, out_b,
                                    *, negative_slope=0.01, use_bf16=False):
    """x: (B, input_size). hidden_params: [(w, b), ...] with w:(fin,fout), b:(1,fout).
    out_w: (f_last, output_size), out_b: (1, output_size). Returns (B, output_size)."""
    B, _ = x.shape
    O = out_w.shape[-1]

    B_pad = _round_up(max(B, 1), 8)       # sublane multiple -> unmasked layouts
    O_pad = _round_up(max(O, 1), 128)     # lane-dense final output slab

    x_p = jnp.pad(x, ((0, B_pad - B), (0, 0)))
    out_w_p = jnp.pad(out_w, ((0, 0), (0, O_pad - O)))
    out_b_p = jnp.pad(out_b, ((0, 0), (0, O_pad - O)))

    flat_params = []
    for w, b in hidden_params:
        flat_params.extend((w, b))
    flat_params.extend((out_w_p, out_b_p))

    compute_dtype = jnp.bfloat16 if use_bf16 else jnp.float32
    kernel = _make_mlp_kernel(len(hidden_params), negative_slope, compute_dtype)

    n_in = 1 + len(flat_params)
    out = pl.pallas_call(
        kernel,
        out_shape=jax.ShapeDtypeStruct((B_pad, O_pad), jnp.float32),
        # whole-array blocks, all operands resident in VMEM for the single invocation
        in_specs=[pl.BlockSpec(memory_space=pltpu.MemorySpace.VMEM)] * n_in,
        out_specs=pl.BlockSpec(memory_space=pltpu.MemorySpace.VMEM),
    )(x_p, *flat_params)

    return out[:B, :O]


# ------------------------------ Parameter init ---------------------------------
def init_params(key, input_size, ann_structure, output_size):
    """U(-1/sqrt(fan_in), 1/sqrt(fan_in)) init matching nn.Linear defaults.
    Weights stored pre-transposed as (fin, fout)."""
    dims = [input_size] + list(ann_structure)
    n_hidden = len(dims) - 1
    keys = jax.random.split(key, 2 * n_hidden + 2)
    hidden_params = []
    for l in range(n_hidden):
        fin, fout = dims[l], dims[l + 1]
        k = 1.0 / float(fin) ** 0.5
        w = jax.random.uniform(keys[2 * l], (fin, fout), jnp.float32, -k, k)
        b = jax.random.uniform(keys[2 * l + 1], (1, fout), jnp.float32, -k, k)
        hidden_params.append((w, b))
    fin = dims[-1]
    k = 1.0 / float(fin) ** 0.5
    out_w = jax.random.uniform(keys[-2], (fin, output_size), jnp.float32, -k, k)
    out_b = jax.random.uniform(keys[-1], (1, output_size), jnp.float32, -k, k)
    return hidden_params, out_w, out_b


# ------------------------------ Pure-JAX reference ------------------------------
def reference_forward(x, hidden_params, out_w, out_b, negative_slope=0.01):
    h = x
    for w, b in hidden_params:
        h = h @ w + b
        h = jnp.where(h >= 0.0, h, negative_slope * h)
    return h @ out_w + out_b


if __name__ == "__main__":
    input_size = 16
    ann_structure = [32, 32]     # hidden layer widths
    output_size = 2              # heteroscedastic head: (mu, log_sigma)
    B = 4

    key = jax.random.PRNGKey(0)
    kx, kp = jax.random.split(key)

    x = jax.random.normal(kx, (B, input_size), jnp.float32)
    hidden_params, out_w, out_b = init_params(kp, input_size, ann_structure,
                                              output_size)

    y = heteroscedastic_dropout_forward(x, hidden_params, out_w, out_b)
    y = jax.block_until_ready(y)

    y_ref = reference_forward(x, hidden_params, out_w, out_b)
    assert y.shape == (B, output_size), y.shape
    assert jnp.all(jnp.isfinite(y))
    assert jnp.allclose(y, y_ref, atol=1e-5, rtol=1e-5), float(
        jnp.max(jnp.abs(y - y_ref)))
    print("KERNEL_OK")
</pallas_src>

<mosaic_0001>
module attributes {stable_mosaic.version = 11 : i64} {
  func.func @kernel(%arg0: memref<8x16xf32, #tpu.memory_space<vmem>>, %arg1: memref<16x32xf32, #tpu.memory_space<vmem>>, %arg2: memref<1x32xf32, #tpu.memory_space<vmem>>, %arg3: memref<32x32xf32, #tpu.memory_space<vmem>>, %arg4: memref<1x32xf32, #tpu.memory_space<vmem>>, %arg5: memref<32x128xf32, #tpu.memory_space<vmem>>, %arg6: memref<1x128xf32, #tpu.memory_space<vmem>>, %arg7: memref<8x128xf32, #tpu.memory_space<vmem>>) attributes {dimension_semantics = [], scalar_prefetch = 0 : i64, scratch_operands = 0 : i64, tpu.core_type = #tpu.core_type<tc>} {
    %c0 = arith.constant 0 : index
    %c0_0 = arith.constant 0 : index
    %0 = vector.load %arg0[%c0, %c0_0] : memref<8x16xf32, #tpu.memory_space<vmem>>, vector<8x16xf32>
    %c0_1 = arith.constant 0 : index
    %c0_2 = arith.constant 0 : index
    %1 = vector.load %arg1[%c0_1, %c0_2] : memref<16x32xf32, #tpu.memory_space<vmem>>, vector<16x32xf32>
    %c0_3 = arith.constant 0 : index
    %c0_4 = arith.constant 0 : index
    %2 = vector.load %arg2[%c0_3, %c0_4] : memref<1x32xf32, #tpu.memory_space<vmem>>, vector<1x32xf32>
    %cst = arith.constant dense<0.000000e+00> : vector<8x32xf32>
    %3 = tpu.matmul %0, %1, %cst {dimension_numbers = #tpu.dot_dimension_numbers<[1], [0], [0], [1], [0, 0, 1, 1], [], []>} : vector<8x16xf32>, vector<16x32xf32>, vector<8x32xf32> -> vector<8x32xf32>
    %4 = vector.broadcast %2 : vector<1x32xf32> to vector<8x32xf32>
    %5 = arith.addf %3, %4 : vector<8x32xf32>
    %cst_5 = arith.constant 0.000000e+00 : f32
    %6 = vector.broadcast %cst_5 : f32 to vector<8x32xf32>
    %7 = arith.cmpf oge, %5, %6 : vector<8x32xf32>
    %cst_6 = arith.constant 0.00999999977 : f32
    %8 = vector.broadcast %cst_6 : f32 to vector<8x32xf32>
    %9 = arith.mulf %8, %5 : vector<8x32xf32>
    %10 = arith.select %7, %5, %9 : vector<8x32xi1>, vector<8x32xf32>
    %c0_7 = arith.constant 0 : index
    %c0_8 = arith.constant 0 : index
    %11 = vector.load %arg3[%c0_7, %c0_8] : memref<32x32xf32, #tpu.memory_space<vmem>>, vector<32x32xf32>
    %c0_9 = arith.constant 0 : index
    %c0_10 = arith.constant 0 : index
    %12 = vector.load %arg4[%c0_9, %c0_10] : memref<1x32xf32, #tpu.memory_space<vmem>>, vector<1x32xf32>
    %cst_11 = arith.constant dense<0.000000e+00> : vector<8x32xf32>
    %13 = tpu.matmul %10, %11, %cst_11 {dimension_numbers = #tpu.dot_dimension_numbers<[1], [0], [0], [1], [0, 0, 1, 1], [], []>} : vector<8x32xf32>, vector<32x32xf32>, vector<8x32xf32> -> vector<8x32xf32>
    %14 = vector.broadcast %12 : vector<1x32xf32> to vector<8x32xf32>
    %15 = arith.addf %13, %14 : vector<8x32xf32>
    %cst_12 = arith.constant 0.000000e+00 : f32
    %16 = vector.broadcast %cst_12 : f32 to vector<8x32xf32>
    %17 = arith.cmpf oge, %15, %16 : vector<8x32xf32>
    %cst_13 = arith.constant 0.00999999977 : f32
    %18 = vector.broadcast %cst_13 : f32 to vector<8x32xf32>
    %19 = arith.mulf %18, %15 : vector<8x32xf32>
    %20 = arith.select %17, %15, %19 : vector<8x32xi1>, vector<8x32xf32>
    %c0_14 = arith.constant 0 : index
    %c0_15 = arith.constant 0 : index
    %21 = vector.load %arg5[%c0_14, %c0_15] : memref<32x128xf32, #tpu.memory_space<vmem>>, vector<32x128xf32>
    %c0_16 = arith.constant 0 : index
    %c0_17 = arith.constant 0 : index
    %22 = vector.load %arg6[%c0_16, %c0_17] : memref<1x128xf32, #tpu.memory_space<vmem>>, vector<1x128xf32>
    %cst_18 = arith.constant dense<0.000000e+00> : vector<8x128xf32>
    %23 = tpu.matmul %20, %21, %cst_18 {dimension_numbers = #tpu.dot_dimension_numbers<[1], [0], [0], [1], [0, 0, 1, 1], [], []>} : vector<8x32xf32>, vector<32x128xf32>, vector<8x128xf32> -> vector<8x128xf32>
    %24 = vector.broadcast %22 : vector<1x128xf32> to vector<8x128xf32>
    %25 = arith.addf %23, %24 : vector<8x128xf32>
    %c0_19 = arith.constant 0 : index
    %c0_20 = arith.constant 0 : index
    %26 = vector.load %arg7[%c0_19, %c0_20] : memref<8x128xf32, #tpu.memory_space<vmem>>, vector<8x128xf32>
    tpu.vector_store %arg7[%c0_19, %c0_20], %25 {strides = array<i32>} : memref<8x128xf32, #tpu.memory_space<vmem>>, vector<8x128xf32>,
    return
  }
}

</mosaic_0001>

<bundles_post_ra>
// kernel: tpu_custom_call.1
= control target key start
LH: loop header
LB: loop body
LE: loop exit
PB: predicated region body
PF: predicated region fallthrough
CT: control target
= control target key end

     0   :  { %12 = vsyncpa [#allocation3], 0  ;;  %s609_s0 = inlined_call_operand.hbm [shape: f32[8,16], index: 0, kind: input, shape index: {}]   ;;  %s610_s1 = inlined_call_operand.hbm [shape: f32[16,32], index: 1, kind: input, shape index: {}]   ;;  %s611_s2 = inlined_call_operand.vmem [shape: f32[1,32], index: 2, kind: input, shape index: {}]   ;;  %s612_s3 = inlined_call_operand.hbm [shape: f32[32,32], index: 3, kind: input, shape index: {}]   ;;  %s613_s4 = inlined_call_operand.vmem [shape: f32[1,32], index: 4, kind: input, shape index: {}]   ;;  %s614_s5 = inlined_call_operand.hbm [shape: f32[32,128], index: 5, kind: input, shape index: {}]   ;;  %s615_s6 = inlined_call_operand.vmem [shape: f32[1,128], index: 6, kind: input, shape index: {}]   ;;  %s616_s7 = inlined_call_operand.hbm [shape: f32[8,128], index: 7, kind: output, shape index: {}]  }
   0x1   :  { %13 = vsyncpa [#allocation6], 0 }
   0x2   :  { %14 = vsyncpa [#allocation9], 0 }
   0x3   :  { %15 = vsyncpa [#allocation4], 0  ;;  %s522_s24 = smov [#allocation5]  }
   0x4   :  { %s31_s25 = sshll.u32 %s522_s24, 4  ;;  %s32_s25 = int_to_ptr.vmem [resolvable:$true] %s31_s25 }
   0x5   :  { %s422_s26 = scalar_lea.vmem %s32_s25, 256  ;;  %p427_p1 = scmp.lt.s32.totalorder %s32_s25, %s32_s25 }
   0x6   :  { %p423_p0 = scmp.ne.s32.totalorder %s32_s25, %s422_s26  ;;  %p428_p2 = scmp.lt.s32.totalorder %s422_s26, %s422_s26 }
   0x8   :  { %p429_p3 = por %p428_p2, %p427_p1 }
   0xa   :  { %p430_p4 = pnand %p429_p3, %p423_p0 }
   0xc   :  { %433 = shalt.err (!%p430_p4)
}
   0xd   :  { %s523_s27 = smov 128   ;;  %s524_s28 = smov 8  }
   0xe   :  { %37 = dma.hbm_to_vmem [thread:$0]  %s610_s1, 256, %s32_s25, [#allocation6], %s523_s27, %s523_s27, %s524_s28  }
   0xf   :  { %s525_s8 = smov [#allocation2]   ;;  %s526_s10 = smov [#allocation7]  }
  0x10   :  { %s22_s9 = sshll.u32 %s525_s8, 4  ;;  %s45_s11 = sshll.u32 %s526_s10, 4  ;;  %s23_s9 = int_to_ptr.vmem [resolvable:$true] %s22_s9  ;;  %s46_s11 = int_to_ptr.vmem [resolvable:$true] %s45_s11 }
  0x11   :  { %s442_s12 = scalar_lea.vmem %s23_s9, 128  ;;  %p447_p6 = scmp.lt.s32.totalorder %s23_s9, %s23_s9 }
  0x12   :  { %p443_p5 = scmp.ne.s32.totalorder %s23_s9, %s442_s12  ;;  %p448_p7 = scmp.lt.s32.totalorder %s442_s12, %s442_s12 }
  0x14   :  { %p449_p8 = por %p448_p7, %p447_p6 }
  0x16   :  { %p450_p9 = pnand %p449_p8, %p443_p5 }
  0x18   :  { %453 = shalt.err (!%p450_p9)
}
  0x19   :  { %25 = dma.hbm_to_vmem [thread:$0]  %s609_s0, 128, %s23_s9, [#allocation3]  }
  0x1a   :  { %s462_s15 = scalar_lea.vmem %s46_s11, 512  ;;  %p467_p11 = scmp.lt.s32.totalorder %s46_s11, %s46_s11 }
  0x1b   :  { %p463_p10 = scmp.ne.s32.totalorder %s46_s11, %s462_s15  ;;  %p468_p12 = scmp.lt.s32.totalorder %s462_s15, %s462_s15 }
  0x1d   :  { %p469_p13 = por %p468_p12, %p467_p11 }
  0x1f   :  { %p470_p0 = pnand %p469_p13, %p463_p10 }
  0x21   :  { %473 = shalt.err (!%p470_p0)
}
  0x22   :  { %51 = dma.hbm_to_vmem [thread:$0]  %s612_s3, 512, %s46_s11, [#allocation6], %s523_s27, %s523_s27, %s524_s28  }
  0x23   :  { %s527_s17 = smov [#allocation8]  }
  0x24   :  { %s59_s18 = sshll.u32 %s527_s17, 4  ;;  %s60_s18 = int_to_ptr.vmem [resolvable:$true] %s59_s18 }
  0x25   :  { %s482_s19 = scalar_lea.vmem %s60_s18, 512  ;;  %p487_p2 = scmp.lt.s32.totalorder %s60_s18, %s60_s18 }
  0x26   :  { %p483_p1 = scmp.ne.s32.totalorder %s60_s18, %s482_s19  ;;  %p488_p3 = scmp.lt.s32.totalorder %s482_s19, %s482_s19 }
  0x28   :  { %p489_p4 = por %p488_p3, %p487_p2 }
  0x2a   :  { %p490_p5 = pnand %p489_p4, %p483_p1 }
  0x2c   :  { %493 = shalt.err (!%p490_p5)
}
  0x2d   :  { %65 = dma.hbm_to_vmem [thread:$0]  %s614_s5, 512, %s60_s18, [#allocation9], %s523_s27, %s523_s27, %s524_s28  }
  0x2e   :  { %514 = dma.done.wait [#allocation3], 128  }
  0x2f   :  { %515 = vsyncadd [#allocation3], 4294967168 }
  0x30   :  { %516 = dma.done.wait [#allocation6], 768  }
  0x31   :  { %517 = vsyncadd [#allocation6], 4294966528 }
  0x32   :  { %518 = dma.done.wait [#allocation9], 512  }
  0x33   :  { %519 = vsyncadd [#allocation9], 4294966784  ;;  %v528_v0 = vmov 0.0   ;;  %vm529_vm0 = vmmov 0   ;;  %v82_v1 = vld [vmem:[#allocation5 + $0x8] sm:$0xff]  ;;  %v81_v2 = vld [vmem:[#allocation5] sm:$0xff] }
  0x34   :  { %376 = vmatprep.subr.mxu0 %v528_v0  ;;  %380 = vmatprep.mubr.msk.f32.mxu0 %vm529_vm0, %v528_v0  ;;  %v80_v3 = vld [vmem:[#allocation2] sm:$0xff]  ;;  %vm90_vm1 = vcmask 130048   ;;  %v170_v4 = vld [vmem:[#allocation7 + $0x18] sm:$0xff]  ;;  %v169_v5 = vld [vmem:[#allocation7 + $0x10] sm:$0xff]  ;;  %vm178_vm3 = vcmask 261120   ;;  %s530_s24 = smov [#allocation10]  }
  0x35   :  { %383 = vmatprep.subr.mxu1 %v528_v0  ;;  %391 = vmatprep.mubr.msk.f32.mxu1 %vm529_vm0, %v528_v0  ;;  %v168_v6 = vld [vmem:[#allocation7 + $0x8] sm:$0xff]  ;;  %v167_v7 = vld [vmem:[#allocation7] sm:$0xff]  ;;  %v258_v8 = vld [vmem:[#allocation8 + $0x18] sm:$0xff]  ;;  %s346_s25 = sshll.u32 %s530_s24, 4  ;;  %s347_s25 = int_to_ptr.vmem [resolvable:$true] %s346_s25 }
  0x36   :  { %377 = vmatpush3.msra.mxu0 %v82_v1  ;;  %384 = vmatpush3.msra.mxu1 %v170_v4  ;;  %v357_v9 = vld [vmem:[%s611_s2] ss:$0 sm:$0xff]  ;;  %v257_v15 = vld [vmem:[#allocation8 + $0x10] sm:$0xff]  ;;  %v255_v17 = vld [vmem:[#allocation8] sm:$0xff]  ;;  %p499_p7 = scmp.lt.s32.totalorder %s347_s25, %s347_s25 }
  0x37   :  { %378 = vmatprep.subr.mxu0 %v528_v0  ;;  %385 = vmatprep.subr.mxu1 %v528_v0  ;;  %v256_v16 = vld [vmem:[#allocation8 + $0x8] sm:$0xff] }
  0x38   :  { %379 = vmatpush3.msra.mxu0 %v81_v2  ;;  %386 = vmatpush3.msra.mxu1 %v169_v5  ;;  %v359_v18 = vld [vmem:[%s613_s4] ss:$0 sm:$0xff]  ;;  %s494_s4 = scalar_lea.vmem %s347_s25, 128 }
  0x39   :  { %381 = vmatmul.mubr.msk.f32.vlgmr.msra.gmra.mxu0 %vm90_vm1, %v80_v3  ;;  %394 = vmatprep.subr.mxu0 %v528_v0  ;;  %v361_v24 = vld [vmem:[%s615_s6] ss:$0 sm:$0xff]  ;;  %p495_p6 = scmp.ne.s32.totalorder %s347_s25, %s494_s4  ;;  %p500_p8 = scmp.lt.s32.totalorder %s494_s4, %s494_s4 }
  0x3a   :  { %402 = vmatprep.mubr.msk.f32.mxu0 %vm529_vm0, %v528_v0  ;;  %387 = vmatprep.subr.mxu1 %v528_v0 }
  0x3b   :  { %388 = vmatpush3.msra.mxu1 %v168_v6  ;;  %395 = vmatpush3.msra.mxu0 %v258_v8  ;;  %p501_p9 = por %p500_p8, %p499_p7 }
  0x3c   :  { %389 = vmatprep.subr.mxu1 %v528_v0  ;;  %396 = vmatprep.subr.mxu0 %v528_v0 }
  0x3d   :  { %390 = vmatpush3.msra.mxu1 %v167_v7  ;;  %397 = vmatpush3.msra.mxu0 %v257_v15  ;;  %p502_p10 = pnand %p501_p9, %p495_p6 }
  0x3e   :  { %398 = vmatprep.subr.mxu0 %v528_v0 }
  0x3f   :  { %399 = vmatpush3.msra.mxu0 %v256_v16 }
  0x40   :  { %400 = vmatprep.subr.mxu0 %v528_v0 }
  0x41   :  { %401 = vmatpush3.msra.mxu0 %v255_v17 }
  0xf9   :  { %v160_v10 = vpop.f32.mrf.mxu0 }
  0xfa   :  { %v161_v11 = vadd.f32 %v357_v9, %v160_v10 }
  0xfb   :  { %v382_v12 = vpop.f32.mrf.mxu0 }
  0xfc   :  { %vm164_vm2 = vcmp.ge.f32.partialorder %v161_v11, 0.0  ;;  %v165_v13 = vmul.f32 0.01, %v161_v11 }
  0xfe   :  { %v166_v14 = vsel %vm164_vm2, %v161_v11, %v165_v13 }
  0xff   :  { %392 = vmatmul.mubr.msk.f32.vlgmr.msra.gmra.mxu1 %vm178_vm3, %v166_v14 }
 0x1bf   :  { %v248_v19 = vpop.f32.mrf.mxu1 }
 0x1c0   :  { %v249_v20 = vadd.f32 %v359_v18, %v248_v19 }
 0x1c1   :  { %v393_v21 = vpop.f32.mrf.mxu1 }
 0x1c2   :  { %vm252_vm4 = vcmp.ge.f32.partialorder %v249_v20, 0.0  ;;  %v253_v22 = vmul.f32 0.01, %v249_v20 }
 0x1c4   :  { %v254_v23 = vsel %vm252_vm4, %v249_v20, %v253_v22 }
 0x1c5   :  { %403 = vmatmul.mubr.msk.f32.vlgmr.msra.gmra.mxu0 %vm178_vm3, %v254_v23 }
 0x285   :  { %v335_v25 = vpop.f32.mrf.mxu0 }
 0x286   :  { %v336_v26 = vadd.f32 %v361_v24, %v335_v25 }
 0x287   :  { %v404_v27 = vpop.f32.mrf.mxu0 }
 0x288   :  { %339 = vst [vmem:[#allocation10] sm:$0xff] %v336_v26 }
 0x289   :  { %505 = shalt.err (!%p502_p10)
}
 0x28a   :  { %349 = dma.vmem_to_hbm [thread:$0]  %s347_s25, 128, %s616_s7, [#allocation4]  }
 0x28b   :  { %520 = dma.done.wait [#allocation4], 128  }
 0x28c   :  { %521 = vsyncadd [#allocation4], 4294967168 }
 0x28d   :  { %353 = vsyncpa [#allocation3], 1 }
 0x28e   :  { %354 = vsyncpa [#allocation6], 1 }
 0x28f   :  { %355 = vsyncpa [#allocation9], 1 }
 0x290   :  { %356 = vsyncpa [#allocation4], 1 }

</bundles_post_ra>
